<compile_context>
chip_gen: v7x
topology: tpu7x:2x2x1
jax: 0.10.0
libtpu: 0.0.40
codegen_flags: <defaults>
</compile_context>

<pallas_src>
import functools

import jax
import jax.numpy as jnp
from jax.experimental import pallas as pl
from jax.experimental.pallas import tpu as pltpu


def _round_up(v, m):
    return (v + m - 1) // m * m


def _vmem_ceiling():
    """Generation-aware VMEM request ceiling (~48 MiB v7x, ~96 MiB v5e/v6e)."""
    try:
        cap = int(pltpu.get_tpu_info().vmem_capacity_bytes)
    except Exception:
        cap = 64 << 20  # conservative (v7x per-TC physical VMEM)
    return max(16 << 20, (cap * 3) // 4)


def _choose_tile(n):
    """Square A' tile (multiple of 128, <=512) and the padded node count."""
    n128 = _round_up(max(n, 1), 128)
    tile = min(512, n128)
    # back off if rounding n up to the tile would add >25% padded rows
    while tile > 128 and _round_up(n128, tile) * 4 > n128 * 5:
        tile //= 2
    return tile, _round_up(n128, tile)


# -----------------------------------------------------------------------------
# Glue (plain XLA): dense A_hat = D^{-1/2} (A + I) D^{-1/2}   (PyG gcn_norm)
# For a static graph this should be computed once and cached across forwards.
# -----------------------------------------------------------------------------
def build_gcn_adjacency(edge_index, num_nodes):
    src, dst = edge_index[0], edge_index[1]
    a = jnp.zeros((num_nodes, num_nodes), jnp.float32)
    a = a.at[dst, src].add(1.0)                      # message flows source -> target
    a = a + jnp.eye(num_nodes, dtype=jnp.float32)    # add self loops (weight 1)
    deg = a.sum(axis=1)
    d_inv_sqrt = jnp.where(deg > 0.0, 1.0 / jnp.sqrt(deg), 0.0)
    return d_inv_sqrt[:, None] * a * d_inv_sqrt[None, :]


# -----------------------------------------------------------------------------
# Kernel 1: Linear.  z = x @ W + b; emit h_0 = bf16(z) and az = alpha * z.
# -----------------------------------------------------------------------------
def _linear_kernel(x_ref, w_ref, b_ref, h0_ref, az_ref, *, alpha):
    z = jnp.dot(x_ref[...], w_ref[...],
                preferred_element_type=jnp.float32) + b_ref[...]
    h0_ref[...] = z.astype(jnp.bfloat16)
    az_ref[...] = alpha * z


def _linear(x_p, w_p, b_p, alpha, tm):
    n_pad, fin_p = x_p.shape
    fp = w_p.shape[1]
    ni = n_pad // tm

    lin_buf = 2 * (4 * tm * fin_p + 4 * fin_p * fp + 4 * fp
                   + 2 * tm * fp + 4 * tm * fp)
    lin_limit = int(min(max(lin_buf + (2 << 20), 16 << 20), _vmem_ceiling()))

    return pl.pallas_call(
        functools.partial(_linear_kernel, alpha=float(alpha)),
        out_shape=(jax.ShapeDtypeStruct((n_pad, fp), jnp.bfloat16),
                   jax.ShapeDtypeStruct((n_pad, fp), jnp.float32)),
        grid=(ni,),
        in_specs=[
            pl.BlockSpec((tm, fin_p), lambda i: (i, 0)),
            pl.BlockSpec((fin_p, fp), lambda i: (0, 0)),
            pl.BlockSpec((1, fp), lambda i: (0, 0)),
        ],
        out_specs=(pl.BlockSpec((tm, fp), lambda i: (i, 0)),
                   pl.BlockSpec((tm, fp), lambda i: (i, 0))),
        compiler_params=pltpu.CompilerParams(
            dimension_semantics=("parallel",),
            vmem_limit_bytes=lin_limit,
        ),
    )(x_p, w_p, b_p)


# -----------------------------------------------------------------------------
# Kernel 2: K APPNP propagation steps.
#   grid = (K, N/TM, N/TK);  h lives in a VMEM bf16 double buffer (never HBM).
#   step k, row i:  h_{k+1}[i] = sum_j A'[i, j] @ h_k[j] + alpha * z[i]
#   The row tile of h_{k+1} is written to the output every step (guarded writes
#   not needed: every pipeline write-back carries valid data; the last one wins).
# -----------------------------------------------------------------------------
def _prop_kernel(az_ref, a_ref, h0_hbm, o_ref, h_ref, acc_ref,
                 *, n_steps, nj, tm, tk, n_pad):
    k = pl.program_id(0)
    i = pl.program_id(1)
    j = pl.program_id(2)

    # one-time seed of h slot 0 with h_0 = z (bf16) straight from HBM
    @pl.when(jnp.logical_and(k == 0, jnp.logical_and(i == 0, j == 0)))
    def _seed():
        pltpu.sync_copy(h0_hbm, h_ref.at[pl.ds(0, n_pad)])

    @pl.when(j == 0)
    def _init():
        acc_ref[...] = az_ref[...]                    # alpha * z[row i]  (f32)

    read_base = (k % 2) * n_pad                       # slot holding h_k
    write_base = ((k + 1) % 2) * n_pad                # slot receiving h_{k+1}

    src = pl.multiple_of(read_base + j * tk, tk)
    h_blk = h_ref[pl.ds(src, tk), :]                  # bf16 column block of h_k
    acc_ref[...] += jnp.dot(a_ref[...], h_blk,
                            preferred_element_type=jnp.float32)

    @pl.when(j == nj - 1)
    def _finalize():
        h_new = acc_ref[...]
        o_ref[...] = h_new                            # valid data every step

        @pl.when(k < n_steps - 1)                     # last step's h is never read
        def _store_h():
            dst = pl.multiple_of(write_base + i * tm, tm)
            h_ref[pl.ds(dst, tm), :] = h_new.astype(jnp.bfloat16)


def _a_block_spec(tm, tk):
    def idx(k, i, j):
        return (i, j)
    try:
        return pl.BlockSpec((tm, tk), idx, pipeline_mode=pl.Buffered(3))
    except TypeError:  # pipeline_mode not supported in this jax version
        return pl.BlockSpec((tm, tk), idx)


def appnp_propagate(x, a_hat, weight, bias, *, k_steps=10, alpha=0.1, tile=None):
    if k_steps < 1:
        raise ValueError("appnp_propagate requires k_steps >= 1 (module uses K=10)")
    n, fin = x.shape
    fout = weight.shape[0]

    if tile is None:
        tm, n_pad = _choose_tile(n)
        tk = tm
    else:
        tm = tk = int(tile)
        n_pad = _round_up(n, tm)
    fin_p = _round_up(fin, 128)
    fp = _round_up(fout, 128)

    # zero-pad to lane-dense / tile-aligned shapes (padded adjacency rows/cols and
    # padded weight columns are zero, so padding never leaks into real rows).
    x_p = jnp.zeros((n_pad, fin_p), jnp.float32).at[:n, :fin].set(
        x.astype(jnp.float32))
    w_p = jnp.zeros((fin_p, fp), jnp.float32).at[:fin, :fout].set(
        weight.T.astype(jnp.float32))
    b_p = jnp.zeros((1, fp), jnp.float32).at[0, :fout].set(
        bias.astype(jnp.float32))
    a_p = jnp.zeros((n_pad, n_pad), jnp.float32).at[:n, :n].set(a_hat)
    a_scaled = ((1.0 - alpha) * a_p).astype(jnp.bfloat16)  # fold (1-alpha) into A'
    # TODO(synk): fp8 (v7x) / int8 (v5e,v6e) A' would halve the dominant HBM stream.

    # Linear + seeds (separate tiny launch; O(N*fin*fout) << K*N^2*fout)
    h0_bf16, az = _linear(x_p, w_p, b_p, alpha, tm)

    ni, nj = n_pad // tm, n_pad // tk
    kernel = functools.partial(_prop_kernel, n_steps=k_steps, nj=nj,
                               tm=tm, tk=tk, n_pad=n_pad)

    # VMEM budget: bf16 h double buffer + f32 acc + pipeline copies of az/A'/out.
    scratch_bytes = 2 * (2 * n_pad * fp) + 4 * tm * fp
    buffer_bytes = (2 * 4 * tm * fp          # az (f32, double-buffered)
                    + 3 * 2 * tm * tk        # A' (bf16, up to triple-buffered)
                    + 2 * 4 * tm * fp)       # out (f32, double-buffered)
    vmem_limit = int(min(max(scratch_bytes + buffer_bytes + (4 << 20), 16 << 20),
                         _vmem_ceiling()))

    cost = pl.CostEstimate(
        flops=int(2 * k_steps * n_pad * n_pad * fp),
        transcendentals=0,
        bytes_accessed=int(k_steps * n_pad * n_pad * 2      # A' stream (dominant)
                           + k_steps * n_pad * fp * 8       # az reads + out writes
                           + n_pad * fp * 2),               # h_0 seed
    )

    out = pl.pallas_call(
        kernel,
        out_shape=jax.ShapeDtypeStruct((n_pad, fp), jnp.float32),
        grid=(k_steps, ni, nj),
        in_specs=[
            pl.BlockSpec((tm, fp), lambda k, i, j: (i, 0)),   # alpha * z row tile
            _a_block_spec(tm, tk),                            # A' (i, j) tile
            pl.BlockSpec(memory_space=pl.ANY),                # h_0 (bf16) raw HBM ref
        ],
        out_specs=pl.BlockSpec((tm, fp), lambda k, i, j: (i, 0)),
        scratch_shapes=[
            pltpu.VMEM((2 * n_pad, fp), jnp.bfloat16),        # resident h double buffer
            pltpu.VMEM((tm, fp), jnp.float32),                # row-tile accumulator
        ],
        compiler_params=pltpu.CompilerParams(
            # TODO(synk): v7x 2-TC split of the row axis needs cross-core h exchange
            # (VMEM_SHARED + per-step core_barrier); keep all axes sequential.
            dimension_semantics=("arbitrary", "arbitrary", "arbitrary"),
            vmem_limit_bytes=vmem_limit,
        ),
        cost_estimate=cost,
    )(az, a_scaled, h0_bf16)

    return out[:n, :fout]


def appnp_model_forward(x, edge_index, weight, bias, *, k_steps=10, alpha=0.1):
    """Matches APPNP_ModelBen1.forward (self.dropout is stored but never applied)."""
    a_hat = build_gcn_adjacency(edge_index, x.shape[0])
    return appnp_propagate(x, a_hat, weight, bias, k_steps=k_steps, alpha=alpha)


# -----------------------------------------------------------------------------
# Pure-JAX references (f32 exact and bf16-quantised, matching the kernel math)
# -----------------------------------------------------------------------------
def _appnp_reference(x, a_hat, weight, bias, k_steps, alpha, quantized):
    z = x @ weight.T + bias
    h = z
    if quantized:
        a_q = ((1.0 - alpha) * a_hat).astype(jnp.bfloat16).astype(jnp.float32)
        for _ in range(k_steps):
            h = a_q @ h.astype(jnp.bfloat16).astype(jnp.float32) + alpha * z
    else:
        for _ in range(k_steps):
            h = (1.0 - alpha) * (a_hat @ h) + alpha * z
    return h


if __name__ == "__main__":
    N = 200          # graph nodes (padded to one 256x256 A' tile internally)
    INPUT_DIM = 48
    OUT_DIM = 12
    K = 10
    ALPHA = 0.1

    key = jax.random.PRNGKey(0)
    kx, kw, kb = jax.random.split(key, 3)

    x = jax.random.normal(kx, (N, INPUT_DIM), dtype=jnp.float32)
    # nn.Linear(input_dim, out_dim): weight (out, in), bias (out,)
    weight = (jax.random.normal(kw, (OUT_DIM, INPUT_DIM))
              / jnp.sqrt(float(INPUT_DIM))).astype(jnp.float32)
    bias = (0.1 * jax.random.normal(kb, (OUT_DIM,))).astype(jnp.float32)

    # symmetric ring graph, edge_index shape (2, 2N)
    src = jnp.arange(N, dtype=jnp.int32)
    dst = (src + 1) % N
    edge_index = jnp.stack(
        [jnp.concatenate([src, dst]), jnp.concatenate([dst, src])], axis=0)

    out = appnp_model_forward(x, edge_index, weight, bias, k_steps=K, alpha=ALPHA)
    out = jax.block_until_ready(out)

    a_hat = build_gcn_adjacency(edge_index, N)
    ref_q = _appnp_reference(x, a_hat, weight, bias, K, ALPHA, quantized=True)
    ref_f = _appnp_reference(x, a_hat, weight, bias, K, ALPHA, quantized=False)

    assert out.shape == (N, OUT_DIM)
    assert bool(jnp.all(jnp.isfinite(out)))
    err_q = float(jnp.max(jnp.abs(out - ref_q)))
    err_f = float(jnp.max(jnp.abs(out - ref_f)))
    assert err_q < 1e-2, f"mismatch vs bf16-matched reference: {err_q}"
    assert err_f < 1e-1, f"mismatch vs f32 reference: {err_f}"
    print("KERNEL_OK")
</pallas_src>

<mosaic_0001>
module attributes {stable_mosaic.version = 11 : i64} {
  func.func @_linear_kernel(%arg0: i32, %arg1: memref<256x128xf32, #tpu.memory_space<vmem>>, %arg2: memref<128x128xf32, #tpu.memory_space<vmem>>, %arg3: memref<1x128xf32, #tpu.memory_space<vmem>>, %arg4: memref<256x128xbf16, #tpu.memory_space<vmem>>, %arg5: memref<256x128xf32, #tpu.memory_space<vmem>>) attributes {dimension_semantics = [#tpu.dimension_semantics<parallel>], iteration_bounds = array<i64: 1>, scalar_prefetch = 0 : i64, scratch_operands = 0 : i64, tpu.core_type = #tpu.core_type<tc>, window_params = [{transform_indices = @transform_0, window_bounds = array<i64: 256, 128>}, {pipeline_mode = #tpu.pipeline_mode<synchronous>, transform_indices = @transform_1, window_bounds = array<i64: 128, 128>}, {pipeline_mode = #tpu.pipeline_mode<synchronous>, transform_indices = @transform_2, window_bounds = array<i64: 1, 128>}, {transform_indices = @transform_3, window_bounds = array<i64: 256, 128>}, {transform_indices = @transform_4, window_bounds = array<i64: 256, 128>}]} {
    %c0 = arith.constant 0 : index
    %c0_0 = arith.constant 0 : index
    %0 = vector.load %arg1[%c0, %c0_0] : memref<256x128xf32, #tpu.memory_space<vmem>>, vector<256x128xf32>
    %c0_1 = arith.constant 0 : index
    %c0_2 = arith.constant 0 : index
    %1 = vector.load %arg2[%c0_1, %c0_2] : memref<128x128xf32, #tpu.memory_space<vmem>>, vector<128x128xf32>
    %cst = arith.constant dense<0.000000e+00> : vector<256x128xf32>
    %2 = tpu.matmul %0, %1, %cst {dimension_numbers = #tpu.dot_dimension_numbers<[1], [0], [0], [1], [0, 0, 1, 1], [], []>} : vector<256x128xf32>, vector<128x128xf32>, vector<256x128xf32> -> vector<256x128xf32>
    %c0_3 = arith.constant 0 : index
    %c0_4 = arith.constant 0 : index
    %3 = vector.load %arg3[%c0_3, %c0_4] : memref<1x128xf32, #tpu.memory_space<vmem>>, vector<1x128xf32>
    %4 = vector.broadcast %3 : vector<1x128xf32> to vector<256x128xf32>
    %5 = arith.addf %2, %4 : vector<256x128xf32>
    %6 = arith.truncf %5 : vector<256x128xf32> to vector<256x128xbf16>
    %c0_5 = arith.constant 0 : index
    %c0_6 = arith.constant 0 : index
    %7 = vector.load %arg4[%c0_5, %c0_6] : memref<256x128xbf16, #tpu.memory_space<vmem>>, vector<256x128xbf16>
    tpu.vector_store %arg4[%c0_5, %c0_6], %6 {strides = array<i32>} : memref<256x128xbf16, #tpu.memory_space<vmem>>, vector<256x128xbf16>,
    %cst_7 = arith.constant 1.000000e-01 : f32
    %8 = vector.broadcast %cst_7 : f32 to vector<256x128xf32>
    %9 = arith.mulf %8, %5 : vector<256x128xf32>
    %c0_8 = arith.constant 0 : index
    %c0_9 = arith.constant 0 : index
    %10 = vector.load %arg5[%c0_8, %c0_9] : memref<256x128xf32, #tpu.memory_space<vmem>>, vector<256x128xf32>
    tpu.vector_store %arg5[%c0_8, %c0_9], %9 {strides = array<i32>} : memref<256x128xf32, #tpu.memory_space<vmem>>, vector<256x128xf32>,
    return
  }
  func.func @transform_0(%arg0: i32) -> (i32, i32) {
    %c0_i32 = arith.constant 0 : i32
    %c0_i32_0 = arith.constant 0 : i32
    return %arg0, %c0_i32 : i32, i32
  }
  func.func @transform_1(%arg0: i32) -> (i32, i32) {
    %c0_i32 = arith.constant 0 : i32
    %c0_i32_0 = arith.constant 0 : i32
    %c0_i32_1 = arith.constant 0 : i32
    return %c0_i32, %c0_i32_0 : i32, i32
  }
  func.func @transform_2(%arg0: i32) -> (i32, i32) {
    %c0_i32 = arith.constant 0 : i32
    %c0_i32_0 = arith.constant 0 : i32
    %c0_i32_1 = arith.constant 0 : i32
    return %c0_i32, %c0_i32_0 : i32, i32
  }
  func.func @transform_3(%arg0: i32) -> (i32, i32) {
    %c0_i32 = arith.constant 0 : i32
    %c0_i32_0 = arith.constant 0 : i32
    return %arg0, %c0_i32 : i32, i32
  }
  func.func @transform_4(%arg0: i32) -> (i32, i32) {
    %c0_i32 = arith.constant 0 : i32
    %c0_i32_0 = arith.constant 0 : i32
    return %arg0, %c0_i32 : i32, i32
  }
}

</mosaic_0001>

<bundles_post_ra>
// kernel: tpu_custom_call.1
= control target key start
LH: loop header
LB: loop body
LE: loop exit
PB: predicated region body
PF: predicated region fallthrough
CT: control target
= control target key end

     0   :  { %10 = vsyncpa [#allocation3], 0  ;;  %s1165_s0 = inlined_call_operand.hbm [shape: f32[256,128], index: 0, kind: input, shape index: {}]   ;;  %s1166_s1 = inlined_call_operand.hbm [shape: f32[128,128], index: 1, kind: input, shape index: {}]   ;;  %s1167_s2 = inlined_call_operand.vmem [shape: f32[1,128], index: 2, kind: input, shape index: {}]   ;;  %s1168_s3 = inlined_call_operand.hbm [shape: bf16[256,128], index: 3, kind: output, shape index: {0}]   ;;  %s1169_s4 = inlined_call_operand.hbm [shape: f32[256,128], index: 4, kind: output, shape index: {1}]  }
   0x1   :  { %11 = vsyncpa [#allocation6], 0 }
   0x2   :  { %12 = vsyncpa [#allocation4], 0 }
   0x3   :  { %13 = vsyncpa [#allocation9], 0  ;;  %s1024_s15 = smov [#allocation2]   ;;  %s928_s19 = scalar_lea.hbm %s1165_s0, 4096 }
   0x4   :  { %s19_s16 = sshll.u32 %s1024_s15, 4  ;;  %p929_p0 = scmp.ne.s32.totalorder %s1165_s0, %s928_s19  ;;  %s20_s16 = int_to_ptr.vmem [resolvable:$true] %s19_s16 }
   0x5   :  { %p932_p1 = scmp.lt.u32.totalorder %s928_s19, %s1165_s0 }
   0x7   :  { %p934_p2 = pnand %p932_p1, %p929_p0 }
   0x9   :  { %937 = shalt.err (!%p934_p2)
}
   0xa   :  { %s938_s24 = scalar_lea.vmem %s20_s16, 4096  ;;  %p943_p4 = scmp.lt.s32.totalorder %s20_s16, %s20_s16 }
   0xb   :  { %p939_p3 = scmp.ne.s32.totalorder %s20_s16, %s938_s24  ;;  %p944_p5 = scmp.lt.s32.totalorder %s938_s24, %s938_s24 }
   0xd   :  { %p945_p6 = por %p944_p5, %p943_p4 }
   0xf   :  { %p946_p7 = pnand %p945_p6, %p939_p3 }
  0x11   :  { %949 = shalt.err (!%p946_p7)
}
  0x12   :  { %s1025_s25 = smov 128   ;;  %s1026_s26 = smov 8  }
  0x13   :  { %25 = dma.hbm_to_vmem [thread:$0]  %s1165_s0, 4096, %s20_s16, [#allocation3], %s1025_s25, %s1025_s25, %s1026_s26  }
  0x14   :  { %s1027_s29 = smov [#allocation5]   ;;  %s950_s7 = scalar_lea.hbm %s1166_s1, 2048 }
  0x15   :  { %s31_s30 = sshll.u32 %s1027_s29, 4  ;;  %p951_p8 = scmp.ne.s32.totalorder %s1166_s1, %s950_s7  ;;  %s32_s30 = int_to_ptr.vmem [resolvable:$true] %s31_s30 }
  0x16   :  { %p954_p9 = scmp.lt.u32.totalorder %s950_s7, %s1166_s1 }
  0x18   :  { %p956_p10 = pnand %p954_p9, %p951_p8 }
  0x1a   :  { %959 = shalt.err (!%p956_p10)
}
  0x1b   :  { %s960_s12 = scalar_lea.vmem %s32_s30, 2048  ;;  %p965_p12 = scmp.lt.s32.totalorder %s32_s30, %s32_s30 }
  0x1c   :  { %p961_p11 = scmp.ne.s32.totalorder %s32_s30, %s960_s12  ;;  %p966_p13 = scmp.lt.s32.totalorder %s960_s12, %s960_s12 }
  0x1e   :  { %p967_p0 = por %p966_p13, %p965_p12 }
  0x20   :  { %p968_p1 = pnand %p967_p0, %p961_p11 }
  0x22   :  { %971 = shalt.err (!%p968_p1)
}
  0x23   :  { %37 = dma.hbm_to_vmem [thread:$0]  %s1166_s1, 2048, %s32_s30, [#allocation6], %s1025_s25, %s1025_s25, %s1026_s26  }
  0x24   :  { %1016 = dma.done.wait [#allocation3], 4096  }
  0x25   :  { %1017 = vsyncadd [#allocation3], 4294963200 }
  0x26   :  { %1018 = dma.done.wait [#allocation6], 2048  }
  0x27   :  { %1019 = vsyncadd [#allocation6], 4294965248  ;;  %v78_v0 = vld [vmem:[#allocation5] sm:$0xff]  ;;  %v79_v1 = vld [vmem:[#allocation5 + $0x8] sm:$0xff]  ;;  %s1029_s16 = smov [#allocation8]  }
  0x28   :  { %v80_v2 = vld [vmem:[#allocation5 + $0x10] sm:$0xff]  ;;  %v872_v3 = vpack.c.bf16 %v79_v1, %v78_v0  ;;  %v81_v4 = vld [vmem:[#allocation5 + $0x18] sm:$0xff]  ;;  %v82_v6 = vld [vmem:[#allocation5 + $0x20] sm:$0xff]  ;;  %s567_s17 = sshll.u32 %s1029_s16, 4  ;;  %s1126_s17 = int_to_ptr.vmem [resolvable:$true] %s567_s17 }
  0x29   :  { %v876_v5 = vpack.c.bf16 %v81_v4, %v80_v2  ;;  %v83_v7 = vld [vmem:[#allocation5 + $0x28] sm:$0xff]  ;;  %v46_v9 = vld [vmem:[#allocation2] sm:$0xff]  ;;  %v84_v11 = vld [vmem:[#allocation5 + $0x30] sm:$0xff] }
  0x2a   :  { %873 = vmatprep.subr.bf16.mxu0 %v872_v3  ;;  %904 = vmatprep.subr.bf16.mxu1 %v872_v3  ;;  %v880_v8 = vpack.c.bf16 %v83_v7, %v82_v6  ;;  %v62_v10 = vld [vmem:[#allocation2 + $0x80] sm:$0xff]  ;;  %v85_v12 = vld [vmem:[#allocation5 + $0x38] sm:$0xff]  ;;  %v87_v15 = vld [vmem:[#allocation5 + $0x48] sm:$0xff] }
  0x2b   :  { %875 = vmatpush3.bf16.msra.mxu0 %v872_v3  ;;  %912 = vmatpush3.bf16.msra.mxu1 %v872_v3  ;;  %v884_v13 = vpack.c.bf16 %v85_v12, %v84_v11  ;;  %v86_v14 = vld [vmem:[#allocation5 + $0x40] sm:$0xff]  ;;  %v88_v17 = vld [vmem:[#allocation5 + $0x50] sm:$0xff]  ;;  %v89_v18 = vld [vmem:[#allocation5 + $0x58] sm:$0xff] }
  0x2c   :  { %877 = vmatprep.subr.bf16.mxu0 %v876_v5  ;;  %905 = vmatprep.subr.bf16.mxu1 %v876_v5  ;;  %v888_v16 = vpack.c.bf16 %v87_v15, %v86_v14  ;;  %v892_v19 = vpack.c.bf16 %v89_v18, %v88_v17  ;;  %v90_v20 = vld [vmem:[#allocation5 + $0x60] sm:$0xff]  ;;  %v91_v21 = vld [vmem:[#allocation5 + $0x68] sm:$0xff]  ;;  %v92_v23 = vld [vmem:[#allocation5 + $0x70] sm:$0xff] }
  0x2d   :  { %824 = vmatprep.mubr.f32.mxu0 %v46_v9  ;;  %848 = vmatprep.mubr.f32.mxu1 %v62_v10  ;;  %v896_v22 = vpack.c.bf16 %v91_v21, %v90_v20  ;;  %v93_v24 = vld [vmem:[#allocation5 + $0x78] sm:$0xff]  ;;  %v47_v26 = vld [vmem:[#allocation2 + $0x8] sm:$0xff]  ;;  %v48_v28 = vld [vmem:[#allocation2 + $0x10] sm:$0xff] }
  0x2e   :  { %v900_v25 = vpack.c.bf16 %v93_v24, %v92_v23  ;;  %v63_v27 = vld [vmem:[#allocation2 + $0x88] sm:$0xff]  ;;  %v64_v29 = vld [vmem:[#allocation2 + $0x90] sm:$0xff]  ;;  %v49_v30 = vld [vmem:[#allocation2 + $0x18] sm:$0xff] }
  0x2f   :  { %879 = vmatpush3.bf16.msra.mxu0 %v876_v5  ;;  %913 = vmatpush3.bf16.msra.mxu1 %v876_v5  ;;  %v65_v31 = vld [vmem:[#allocation2 + $0x98] sm:$0xff]  ;;  %v50_v32 = vld [vmem:[#allocation2 + $0x20] sm:$0xff]  ;;  %v51_v34 = vld [vmem:[#allocation2 + $0x28] sm:$0xff] }
  0x30   :  { %881 = vmatprep.subr.bf16.mxu0 %v880_v8  ;;  %906 = vmatprep.subr.bf16.mxu1 %v880_v8  ;;  %v66_v33 = vld [vmem:[#allocation2 + $0xa0] sm:$0xff]  ;;  %v67_v35 = vld [vmem:[#allocation2 + $0xa8] sm:$0xff]  ;;  %v52_v36 = vld [vmem:[#allocation2 + $0x30] sm:$0xff] }
  0x31   :  { %v68_v37 = vld [vmem:[#allocation2 + $0xb0] sm:$0xff]  ;;  %v53_v38 = vld [vmem:[#allocation2 + $0x38] sm:$0xff]  ;;  %v54_v40 = vld [vmem:[#allocation2 + $0x40] sm:$0xff] }
  0x32   :  { %v69_v39 = vld [vmem:[#allocation2 + $0xb8] sm:$0xff]  ;;  %v70_v41 = vld [vmem:[#allocation2 + $0xc0] sm:$0xff]  ;;  %v55_v42 = vld [vmem:[#allocation2 + $0x48] sm:$0xff] }
  0x33   :  { %883 = vmatpush3.bf16.msra.mxu0 %v880_v8  ;;  %914 = vmatpush3.bf16.msra.mxu1 %v880_v8  ;;  %v71_v43 = vld [vmem:[#allocation2 + $0xc8] sm:$0xff]  ;;  %v56_v44 = vld [vmem:[#allocation2 + $0x50] sm:$0xff]  ;;  %v57_v46 = vld [vmem:[#allocation2 + $0x58] sm:$0xff] }
  0x34   :  { %885 = vmatprep.subr.bf16.mxu0 %v884_v13  ;;  %907 = vmatprep.subr.bf16.mxu1 %v884_v13  ;;  %v72_v45 = vld [vmem:[#allocation2 + $0xd0] sm:$0xff]  ;;  %v73_v47 = vld [vmem:[#allocation2 + $0xd8] sm:$0xff]  ;;  %v58_v48 = vld [vmem:[#allocation2 + $0x60] sm:$0xff] }
  0x35   :  { %v74_v49 = vld [vmem:[#allocation2 + $0xe0] sm:$0xff]  ;;  %v59_v50 = vld [vmem:[#allocation2 + $0x68] sm:$0xff]  ;;  %v60_v52 = vld [vmem:[#allocation2 + $0x70] sm:$0xff] }
  0x36   :  { %v75_v51 = vld [vmem:[#allocation2 + $0xe8] sm:$0xff]  ;;  %v76_v53 = vld [vmem:[#allocation2 + $0xf0] sm:$0xff]  ;;  %v61_v54 = vld [vmem:[#allocation2 + $0x78] sm:$0xff] }
  0x37   :  { %887 = vmatpush3.bf16.msra.mxu0 %v884_v13  ;;  %915 = vmatpush3.bf16.msra.mxu1 %v884_v13  ;;  %v77_v55 = vld [vmem:[#allocation2 + $0xf8] sm:$0xff]  ;;  %v1090_v56 = vld [vmem:[%s1167_s2] ss:$0 sm:$0xff]  ;;  %s1028_s2 = smov [#allocation7]  }
  0x38   :  { %889 = vmatprep.subr.bf16.mxu0 %v888_v16  ;;  %908 = vmatprep.subr.bf16.mxu1 %v888_v16  ;;  %s555_s15 = sshll.u32 %s1028_s2, 4  ;;  %s1124_s15 = int_to_ptr.vmem [resolvable:$true] %s555_s15 }
  0x39   :  { %s972_s18 = scalar_lea.vmem %s1124_s15, 2048  ;;  %p977_p3 = scmp.lt.s32.totalorder %s1124_s15, %s1124_s15 }
  0x3a   :  { %p973_p2 = scmp.ne.s32.totalorder %s1124_s15, %s972_s18  ;;  %p978_p4 = scmp.lt.s32.totalorder %s972_s18, %s972_s18 }
  0x3b   :  { %891 = vmatpush3.bf16.msra.mxu0 %v888_v16  ;;  %916 = vmatpush3.bf16.msra.mxu1 %v888_v16 }
  0x3c   :  { %893 = vmatprep.subr.bf16.mxu0 %v892_v19  ;;  %909 = vmatprep.subr.bf16.mxu1 %v892_v19  ;;  %p979_p5 = por %p978_p4, %p977_p3 }
  0x3e   :  { %p980_p6 = pnand %p979_p5, %p973_p2 }
  0x3f   :  { %895 = vmatpush3.bf16.msra.mxu0 %v892_v19  ;;  %917 = vmatpush3.bf16.msra.mxu1 %v892_v19 }
  0x40   :  { %897 = vmatprep.subr.bf16.mxu0 %v896_v22  ;;  %910 = vmatprep.subr.bf16.mxu1 %v896_v22 }
  0x43   :  { %899 = vmatpush3.bf16.msra.mxu0 %v896_v22  ;;  %918 = vmatpush3.bf16.msra.mxu1 %v896_v22 }
  0x44   :  { %901 = vmatprep.subr.bf16.mxu0 %v900_v25  ;;  %911 = vmatprep.subr.bf16.mxu1 %v900_v25 }
  0x47   :  { %903 = vmatpush3.bf16.msra.mxu0 %v900_v25  ;;  %919 = vmatpush3.bf16.msra.mxu1 %v900_v25 }
  0x4a   :  { %825 = vmatmul.mubr.f32.vlgmr.msra.gmra.mrb[0].mxu0 %v47_v26  ;;  %849 = vmatmul.mubr.f32.vlgmr.msra.gmra.mrb[0].mxu1 %v63_v27 }
  0x4b   :  { %827 = vmatprep.mubr.f32.mxu0 %v48_v28  ;;  %851 = vmatprep.mubr.f32.mxu1 %v64_v29 }
  0x4e   :  { %828 = vmatmul.mubr.f32.gmra.mrb[2].mxu0 %v49_v30  ;;  %852 = vmatmul.mubr.f32.gmra.mrb[2].mxu1 %v65_v31 }
  0x4f   :  { %830 = vmatprep.mubr.f32.mxu0 %v50_v32  ;;  %854 = vmatprep.mubr.f32.mxu1 %v66_v33 }
  0x52   :  { %831 = vmatmul.mubr.f32.gmra.mrb[4].mxu0 %v51_v34  ;;  %855 = vmatmul.mubr.f32.gmra.mrb[4].mxu1 %v67_v35 }
  0x53   :  { %833 = vmatprep.mubr.f32.mxu0 %v52_v36  ;;  %857 = vmatprep.mubr.f32.mxu1 %v68_v37 }
  0x56   :  { %834 = vmatmul.mubr.f32.gmra.mrb[6].mxu0 %v53_v38  ;;  %858 = vmatmul.mubr.f32.gmra.mrb[6].mxu1 %v69_v39 }
  0x57   :  { %836 = vmatprep.mubr.f32.mxu0 %v54_v40  ;;  %860 = vmatprep.mubr.f32.mxu1 %v70_v41 }
  0x5a   :  { %837 = vmatmul.mubr.f32.gmra.mrb[8].mxu0 %v55_v42  ;;  %861 = vmatmul.mubr.f32.gmra.mrb[8].mxu1 %v71_v43 }
  0x5b   :  { %839 = vmatprep.mubr.f32.mxu0 %v56_v44  ;;  %863 = vmatprep.mubr.f32.mxu1 %v72_v45 }
  0x5e   :  { %840 = vmatmul.mubr.f32.gmra.mrb[10].mxu0 %v57_v46  ;;  %864 = vmatmul.mubr.f32.gmra.mrb[10].mxu1 %v73_v47 }
  0x5f   :  { %842 = vmatprep.mubr.f32.mxu0 %v58_v48  ;;  %866 = vmatprep.mubr.f32.mxu1 %v74_v49 }
  0x62   :  { %843 = vmatmul.mubr.f32.gmra.mrb[12].mxu0 %v59_v50  ;;  %867 = vmatmul.mubr.f32.gmra.mrb[12].mxu1 %v75_v51 }
  0x63   :  { %845 = vmatprep.mubr.f32.mxu0 %v60_v52  ;;  %869 = vmatprep.mubr.f32.mxu1 %v76_v53 }
  0x66   :  { %846 = vmatmul.mubr.f32.gmra.mrb[14].mxu0 %v61_v54  ;;  %870 = vmatmul.mubr.f32.gmra.mrb[14].mxu1 %v77_v55 }
 0x11d   :  { %v826_v57 = vpop.f32.mrb[0].mxu0  ;;  %v850_v58 = vpop.f32.mrb[0].mxu1 }
 0x11e   :  { %v173_v59 = vadd.f32 %v826_v57, %v1090_v56  ;;  %v253_v60 = vadd.f32 %v850_v58, %v1090_v56  ;;  %v167_v61 = vpop.f32.mrb[1].mxu0  ;;  %v247_v62 = vpop.f32.mrb[1].mxu1 }
 0x11f   :  { %v168_v63 = vadd.f32 %v1090_v56, %v167_v61  ;;  %v248_v0 = vadd.f32 %v1090_v56, %v247_v62 }
 0x120   :  { %v487_v1 = vmul.f32 0.1, %v173_v59  ;;  %v503_v2 = vmul.f32 0.1, %v253_v60 }
 0x121   :  { %v652_v3 = vpack.c.bf16 %v173_v59, %v168_v63  ;;  %v486_v4 = vmul.f32 0.1, %v168_v63  ;;  %v692_v5 = vpack.c.bf16 %v253_v60, %v248_v0  ;;  %v502_v6 = vmul.f32 0.1, %v248_v0  ;;  %v829_v7 = vpop.f32.mrb[2].mxu0  ;;  %v853_v8 = vpop.f32.mrb[2].mxu1 }
 0x122   :  { %519 = vst [vmem:[#allocation8 + $0x8] sm:$0xff] %v487_v1  ;;  %535 = vst [vmem:[#allocation8 + $0x88] sm:$0xff] %v503_v2  ;;  %v183_v9 = vadd.f32 %v829_v7, %v1090_v56  ;;  %v263_v10 = vadd.f32 %v853_v8, %v1090_v56  ;;  %v177_v11 = vpop.f32.mrb[3].mxu0  ;;  %v257_v12 = vpop.f32.mrb[3].mxu1 }
 0x123   :  { %653 = vst [vmem:[#allocation7] sm:$0xff] %v652_v3   ;;  %518 = vst [vmem:[#allocation8] sm:$0xff] %v486_v4  ;;  %v178_v13 = vadd.f32 %v1090_v56, %v177_v11  ;;  %v258_v14 = vadd.f32 %v1090_v56, %v257_v12 }
 0x124   :  { %736 = vst [vmem:[#allocation7 + $0x40] sm:$0xff] %v692_v5   ;;  %534 = vst [vmem:[#allocation8 + $0x80] sm:$0xff] %v502_v6  ;;  %v489_v15 = vmul.f32 0.1, %v183_v9  ;;  %v505_v16 = vmul.f32 0.1, %v263_v10 }
 0x125   :  { %v657_v17 = vpack.c.bf16 %v183_v9, %v178_v13  ;;  %v488_v18 = vmul.f32 0.1, %v178_v13  ;;  %v697_v19 = vpack.c.bf16 %v263_v10, %v258_v14  ;;  %v504_v20 = vmul.f32 0.1, %v258_v14  ;;  %v832_v21 = vpop.f32.mrb[4].mxu0  ;;  %v856_v22 = vpop.f32.mrb[4].mxu1 }
 0x126   :  { %521 = vst [vmem:[#allocation8 + $0x18] sm:$0xff] %v489_v15  ;;  %537 = vst [vmem:[#allocation8 + $0x98] sm:$0xff] %v505_v16  ;;  %v193_v23 = vadd.f32 %v832_v21, %v1090_v56  ;;  %v273_v24 = vadd.f32 %v856_v22, %v1090_v56  ;;  %v187_v25 = vpop.f32.mrb[5].mxu0  ;;  %v267_v26 = vpop.f32.mrb[5].mxu1 }
 0x127   :  { %729 = vst [vmem:[#allocation7 + $0x8] sm:$0xff] %v657_v17   ;;  %520 = vst [vmem:[#allocation8 + $0x10] sm:$0xff] %v488_v18  ;;  %v188_v27 = vadd.f32 %v1090_v56, %v187_v25  ;;  %v268_v28 = vadd.f32 %v1090_v56, %v267_v26 }
 0x128   :  { %737 = vst [vmem:[#allocation7 + $0x48] sm:$0xff] %v697_v19   ;;  %536 = vst [vmem:[#allocation8 + $0x90] sm:$0xff] %v504_v20  ;;  %v491_v29 = vmul.f32 0.1, %v193_v23  ;;  %v507_v30 = vmul.f32 0.1, %v273_v24 }
 0x129   :  { %v662_v31 = vpack.c.bf16 %v193_v23, %v188_v27  ;;  %v490_v32 = vmul.f32 0.1, %v188_v27  ;;  %v702_v33 = vpack.c.bf16 %v273_v24, %v268_v28  ;;  %v506_v34 = vmul.f32 0.1, %v268_v28  ;;  %v835_v35 = vpop.f32.mrb[6].mxu0  ;;  %v859_v36 = vpop.f32.mrb[6].mxu1 }
 0x12a   :  { %523 = vst [vmem:[#allocation8 + $0x28] sm:$0xff] %v491_v29  ;;  %539 = vst [vmem:[#allocation8 + $0xa8] sm:$0xff] %v507_v30  ;;  %v203_v37 = vadd.f32 %v835_v35, %v1090_v56  ;;  %v283_v38 = vadd.f32 %v859_v36, %v1090_v56  ;;  %v197_v39 = vpop.f32.mrb[7].mxu0  ;;  %v277_v40 = vpop.f32.mrb[7].mxu1 }
 0x12b   :  { %730 = vst [vmem:[#allocation7 + $0x10] sm:$0xff] %v662_v31   ;;  %522 = vst [vmem:[#allocation8 + $0x20] sm:$0xff] %v490_v32  ;;  %v198_v41 = vadd.f32 %v1090_v56, %v197_v39  ;;  %v278_v42 = vadd.f32 %v1090_v56, %v277_v40 }
 0x12c   :  { %738 = vst [vmem:[#allocation7 + $0x50] sm:$0xff] %v702_v33   ;;  %538 = vst [vmem:[#allocation8 + $0xa0] sm:$0xff] %v506_v34  ;;  %v493_v43 = vmul.f32 0.1, %v203_v37  ;;  %v509_v44 = vmul.f32 0.1, %v283_v38 }
 0x12d   :  { %v667_v45 = vpack.c.bf16 %v203_v37, %v198_v41  ;;  %v492_v46 = vmul.f32 0.1, %v198_v41  ;;  %v707_v47 = vpack.c.bf16 %v283_v38, %v278_v42  ;;  %v508_v48 = vmul.f32 0.1, %v278_v42  ;;  %v838_v49 = vpop.f32.mrb[8].mxu0  ;;  %v862_v50 = vpop.f32.mrb[8].mxu1 }
 0x12e   :  { %525 = vst [vmem:[#allocation8 + $0x38] sm:$0xff] %v493_v43  ;;  %541 = vst [vmem:[#allocation8 + $0xb8] sm:$0xff] %v509_v44  ;;  %v213_v51 = vadd.f32 %v838_v49, %v1090_v56  ;;  %v293_v52 = vadd.f32 %v862_v50, %v1090_v56  ;;  %v207_v53 = vpop.f32.mrb[9].mxu0  ;;  %v287_v54 = vpop.f32.mrb[9].mxu1 }
 0x12f   :  { %731 = vst [vmem:[#allocation7 + $0x18] sm:$0xff] %v667_v45   ;;  %524 = vst [vmem:[#allocation8 + $0x30] sm:$0xff] %v492_v46  ;;  %v208_v55 = vadd.f32 %v1090_v56, %v207_v53  ;;  %v288_v57 = vadd.f32 %v1090_v56, %v287_v54 }
 0x130   :  { %739 = vst [vmem:[#allocation7 + $0x58] sm:$0xff] %v707_v47   ;;  %540 = vst [vmem:[#allocation8 + $0xb0] sm:$0xff] %v508_v48  ;;  %v495_v58 = vmul.f32 0.1, %v213_v51  ;;  %v511_v59 = vmul.f32 0.1, %v293_v52 }
 0x131   :  { %v672_v60 = vpack.c.bf16 %v213_v51, %v208_v55  ;;  %v494_v61 = vmul.f32 0.1, %v208_v55  ;;  %v712_v62 = vpack.c.bf16 %v293_v52, %v288_v57  ;;  %v510_v63 = vmul.f32 0.1, %v288_v57  ;;  %v841_v0 = vpop.f32.mrb[10].mxu0  ;;  %v865_v1 = vpop.f32.mrb[10].mxu1 }
 0x132   :  { %527 = vst [vmem:[#allocation8 + $0x48] sm:$0xff] %v495_v58  ;;  %543 = vst [vmem:[#allocation8 + $0xc8] sm:$0xff] %v511_v59  ;;  %v223_v2 = vadd.f32 %v841_v0, %v1090_v56  ;;  %v303_v3 = vadd.f32 %v865_v1, %v1090_v56  ;;  %v217_v4 = vpop.f32.mrb[11].mxu0  ;;  %v297_v5 = vpop.f32.mrb[11].mxu1 }
 0x133   :  { %732 = vst [vmem:[#allocation7 + $0x20] sm:$0xff] %v672_v60   ;;  %526 = vst [vmem:[#allocation8 + $0x40] sm:$0xff] %v494_v61  ;;  %v218_v6 = vadd.f32 %v1090_v56, %v217_v4  ;;  %v298_v7 = vadd.f32 %v1090_v56, %v297_v5 }
 0x134   :  { %740 = vst [vmem:[#allocation7 + $0x60] sm:$0xff] %v712_v62   ;;  %542 = vst [vmem:[#allocation8 + $0xc0] sm:$0xff] %v510_v63  ;;  %v497_v8 = vmul.f32 0.1, %v223_v2  ;;  %v513_v9 = vmul.f32 0.1, %v303_v3 }
 0x135   :  { %v677_v10 = vpack.c.bf16 %v223_v2, %v218_v6  ;;  %v496_v11 = vmul.f32 0.1, %v218_v6  ;;  %v717_v12 = vpack.c.bf16 %v303_v3, %v298_v7  ;;  %v512_v13 = vmul.f32 0.1, %v298_v7  ;;  %v844_v14 = vpop.f32.mrb[12].mxu0  ;;  %v868_v15 = vpop.f32.mrb[12].mxu1 }
 0x136   :  { %529 = vst [vmem:[#allocation8 + $0x58] sm:$0xff] %v497_v8  ;;  %545 = vst [vmem:[#allocation8 + $0xd8] sm:$0xff] %v513_v9  ;;  %v233_v16 = vadd.f32 %v844_v14, %v1090_v56  ;;  %v313_v17 = vadd.f32 %v868_v15, %v1090_v56  ;;  %v227_v18 = vpop.f32.mrb[13].mxu0  ;;  %v307_v19 = vpop.f32.mrb[13].mxu1 }
 0x137   :  { %733 = vst [vmem:[#allocation7 + $0x28] sm:$0xff] %v677_v10   ;;  %528 = vst [vmem:[#allocation8 + $0x50] sm:$0xff] %v496_v11  ;;  %v228_v20 = vadd.f32 %v1090_v56, %v227_v18  ;;  %v308_v21 = vadd.f32 %v1090_v56, %v307_v19 }
 0x138   :  { %741 = vst [vmem:[#allocation7 + $0x68] sm:$0xff] %v717_v12   ;;  %544 = vst [vmem:[#allocation8 + $0xd0] sm:$0xff] %v512_v13  ;;  %v499_v22 = vmul.f32 0.1, %v233_v16  ;;  %v515_v23 = vmul.f32 0.1, %v313_v17 }
 0x139   :  { %v682_v24 = vpack.c.bf16 %v233_v16, %v228_v20  ;;  %v498_v25 = vmul.f32 0.1, %v228_v20  ;;  %v722_v26 = vpack.c.bf16 %v313_v17, %v308_v21  ;;  %v514_v27 = vmul.f32 0.1, %v308_v21  ;;  %v847_v28 = vpop.f32.mrb[14].mxu0  ;;  %v871_v29 = vpop.f32.mrb[14].mxu1 }
 0x13a   :  { %531 = vst [vmem:[#allocation8 + $0x68] sm:$0xff] %v499_v22  ;;  %547 = vst [vmem:[#allocation8 + $0xe8] sm:$0xff] %v515_v23  ;;  %v243_v30 = vadd.f32 %v847_v28, %v1090_v56  ;;  %v323_v31 = vadd.f32 %v871_v29, %v1090_v56  ;;  %v237_v32 = vpop.f32.mrb[15].mxu0  ;;  %v317_v33 = vpop.f32.mrb[15].mxu1 }
 0x13b   :  { %734 = vst [vmem:[#allocation7 + $0x30] sm:$0xff] %v682_v24   ;;  %530 = vst [vmem:[#allocation8 + $0x60] sm:$0xff] %v498_v25  ;;  %v238_v34 = vadd.f32 %v1090_v56, %v237_v32  ;;  %v318_v35 = vadd.f32 %v1090_v56, %v317_v33 }
 0x13c   :  { %742 = vst [vmem:[#allocation7 + $0x70] sm:$0xff] %v722_v26   ;;  %546 = vst [vmem:[#allocation8 + $0xe0] sm:$0xff] %v514_v27  ;;  %v501_v36 = vmul.f32 0.1, %v243_v30  ;;  %v517_v37 = vmul.f32 0.1, %v323_v31 }
 0x13d   :  { %v687_v38 = vpack.c.bf16 %v243_v30, %v238_v34  ;;  %v500_v39 = vmul.f32 0.1, %v238_v34  ;;  %v727_v40 = vpack.c.bf16 %v323_v31, %v318_v35  ;;  %v516_v41 = vmul.f32 0.1, %v318_v35 }
 0x13e   :  { %533 = vst [vmem:[#allocation8 + $0x78] sm:$0xff] %v501_v36  ;;  %549 = vst [vmem:[#allocation8 + $0xf8] sm:$0xff] %v517_v37 }
 0x13f   :  { %735 = vst [vmem:[#allocation7 + $0x38] sm:$0xff] %v687_v38   ;;  %532 = vst [vmem:[#allocation8 + $0x70] sm:$0xff] %v500_v39 }
 0x140   :  { %743 = vst [vmem:[#allocation7 + $0x78] sm:$0xff] %v727_v40   ;;  %548 = vst [vmem:[#allocation8 + $0xf0] sm:$0xff] %v516_v41 }
 0x141   :  { %983 = shalt.err (!%p980_p6)
}
 0x142   :  { %s984_s21 = scalar_lea.hbm %s1168_s3, 2048 }
 0x143   :  { %p985_p7 = scmp.ne.s32.totalorder %s1168_s3, %s984_s21  ;;  %p988_p8 = scmp.lt.u32.totalorder %s984_s21, %s1168_s3 }
 0x145   :  { %p990_p9 = pnand %p988_p8, %p985_p7 }
 0x147   :  { %993 = shalt.err (!%p990_p9)
}
 0x148   :  { %s1030_s28 = smov 64   ;;  %s1031_s29 = smov 4  }
 0x149   :  { %561 = dma.vmem_to_hbm [thread:$0]  %s1124_s15, 2048, %s1168_s3, [#allocation4], %s1030_s28, %s1030_s28, %s1031_s29  }
 0x14a   :  { %s994_s6 = scalar_lea.vmem %s1126_s17, 4096  ;;  %p999_p11 = scmp.lt.s32.totalorder %s1126_s17, %s1126_s17 }
 0x14b   :  { %p995_p10 = scmp.ne.s32.totalorder %s1126_s17, %s994_s6  ;;  %p1000_p12 = scmp.lt.s32.totalorder %s994_s6, %s994_s6 }
 0x14d   :  { %p1001_p13 = por %p1000_p12, %p999_p11 }
 0x14f   :  { %p1002_p0 = pnand %p1001_p13, %p995_p10 }
 0x151   :  { %1005 = shalt.err (!%p1002_p0)
}
 0x152   :  { %s1006_s9 = scalar_lea.hbm %s1169_s4, 4096 }
 0x153   :  { %p1007_p1 = scmp.ne.s32.totalorder %s1169_s4, %s1006_s9  ;;  %p1010_p2 = scmp.lt.u32.totalorder %s1006_s9, %s1169_s4 }
 0x155   :  { %p1012_p3 = pnand %p1010_p2, %p1007_p1 }
 0x157   :  { %1015 = shalt.err (!%p1012_p3)
}
 0x158   :  { %573 = dma.vmem_to_hbm [thread:$0]  %s1126_s17, 4096, %s1169_s4, [#allocation9], %s1025_s25, %s1025_s25, %s1026_s26  }
 0x159   :  { %1020 = dma.done.wait [#allocation4], 2048  }
 0x15a   :  { %1021 = vsyncadd [#allocation4], 4294965248 }
 0x15b   :  { %1022 = dma.done.wait [#allocation9], 4096  }
 0x15c   :  { %1023 = vsyncadd [#allocation9], 4294963200 }
 0x15d   :  { %580 = vsyncpa [#allocation3], 1 }
 0x15e   :  { %581 = vsyncpa [#allocation6], 1 }
 0x15f   :  { %582 = vsyncpa [#allocation4], 1 }
 0x160   :  { %583 = vsyncpa [#allocation9], 1 }

</bundles_post_ra>
